<compile_context>
chip_gen: v7x
topology: tpu7x:2x2x1
jax: 0.10.0
libtpu: 0.0.40
codegen_flags: <defaults>
</compile_context>

<pallas_src>
import functools

import jax
import jax.numpy as jnp
from jax.experimental import pallas as pl
from jax.experimental.pallas import tpu as pltpu


def _round_down(x, m):
    return (x // m) * m


def _device_kind():
    try:
        return jax.devices()[0].device_kind.lower()
    except Exception:
        return ""


def _vmem_capacity_bytes():
    """Per-TensorCore physical VMEM (best effort; conservative fallback)."""
    kind = _device_kind()
    if "v7" in kind:
        hint = 64 * 1024 * 1024
    elif any(t in kind for t in ("v4", "v5", "v6")):
        hint = 128 * 1024 * 1024
    else:
        hint = 64 * 1024 * 1024            # unknown part: assume the small one
    try:
        cap = getattr(pltpu.get_tpu_info(), "vmem_capacity_bytes", None)
        if cap:
            return min(int(cap), hint)     # never exceed the per-TC heuristic
    except Exception:
        pass
    return hint


def _num_tensorcores():
    """TensorCores one pallas_call can split a 'parallel' grid axis across."""
    try:
        info = pltpu.get_tpu_info()
        for name in ("num_tensorcores", "tensorcore_count", "num_cores"):
            val = getattr(info, name, None)
            if isinstance(val, int) and val >= 1:
                return min(val, 2)
    except Exception:
        pass
    kind = _device_kind()
    if "lite" in kind or "v5e" in kind or "v6" in kind:
        return 1                            # single-TC parts (v5e / v6e)
    if "v7" in kind or "v4" in kind or "v5p" in kind:
        return 2                            # dual-TC / megacore parts
    return 1                                # unknown: 1 is always correct


def _label_smoothing_kernel(pred_ref, tgt_ref, out_ref, m_ref, s_ref, w_ref, *,
                            confidence, smoothing, n_total, c_total,
                            mask_rows, mask_cols):
    p = pl.program_id(0)                    # megacore split ("parallel")
    j = pl.program_id(1)                    # batch tile on this core ("arbitrary")
    k = pl.program_id(2)                    # class tile ("arbitrary", innermost)
    nk = pl.num_programs(2)
    tiles_per_core = pl.num_programs(1)

    # Per-core loss accumulator lives in the resident (1,1) output block.
    @pl.when(jnp.logical_and(j == 0, k == 0))
    def _init_out():
        out_ref[...] = jnp.zeros_like(out_ref)

    # Online-LSE carries, re-initialized at the first class tile of each row block.
    @pl.when(k == 0)
    def _init_carry():
        m_ref[...] = jnp.full_like(m_ref, -jnp.inf)
        s_ref[...] = jnp.zeros_like(s_ref)
        w_ref[...] = jnp.zeros_like(w_ref)

    # Stream in input dtype; cast once to f32 for stable exp/log.  The full-tile
    # f32 temporaries are accounted for in the wrapper's VMEM budget.
    x = pred_ref[...].astype(jnp.float32)                           # (tn, tc)
    tn, tc = x.shape

    # Fused weighted-linear pass:
    #   wsum_row = sum_c (confidence*[c==target] + smoothing/C) * x_c
    # (replaces separate sum_x and x[target] reductions).
    col = jax.lax.broadcasted_iota(jnp.int32, (tn, tc), 1)          # local class idx
    tgt_local = tgt_ref[...] - k * tc                               # (tn, 1)
    on_val = jnp.float32(confidence + smoothing / c_total)
    off_val = jnp.float32(smoothing / c_total)
    wx = jnp.where(col == tgt_local, on_val, off_val) * x

    if mask_cols:                                                   # partial last class tile
        valid_c = col < (c_total - k * tc)
        x_safe = jnp.where(valid_c, x, -jnp.inf)                    # drops out of max & exp
        wx = jnp.where(valid_c, wx, 0.0)
    else:
        x_safe = x

    tile_max = jnp.max(x_safe, axis=-1, keepdims=True)              # (tn, 1)
    tile_wsum = jnp.sum(wx, axis=-1, keepdims=True)                 # (tn, 1)

    # Online logsumexp across class tiles.
    m_old = m_ref[...]
    m_new = jnp.maximum(m_old, tile_max)
    tile_es = jnp.sum(jnp.exp(x_safe - m_new), axis=-1, keepdims=True)
    s_ref[...] = s_ref[...] * jnp.exp(m_old - m_new) + tile_es
    w_ref[...] = w_ref[...] + tile_wsum
    m_ref[...] = m_new

    @pl.when(k == nk - 1)
    def _finalize():
        per_row = m_ref[...] + jnp.log(s_ref[...]) - w_ref[...]     # (tn, 1)
        if mask_rows:
            # Mask rows past N (partial last tile / clamped phantom tiles).  Keep
            # this a true select so garbage-row NaN/Inf never reaches the sum.
            block = p * tiles_per_core + j
            row = jax.lax.broadcasted_iota(jnp.int32, (tn, 1), 0)
            per_row = jnp.where(block * tn + row < n_total, per_row, 0.0)
        out_ref[...] += jnp.sum(per_row, axis=0, keepdims=True)


def label_smoothing_loss(pred, target, smoothing=0.1, tile_n=None, tile_c=None,
                         num_cores=None):
    """pred: (N, C) float logits, target: (N,) int class ids -> scalar f32 loss."""
    N, C = pred.shape
    confidence = 1.0 - smoothing
    tgt2d = target.reshape(N, 1).astype(jnp.int32)
    itemsize = jnp.dtype(pred.dtype).itemsize
    pack = 8 * max(1, 4 // itemsize)        # sublane packing: 8 f32 / 16 bf16 / 32 int8

    # --- generation-aware VMEM budget ---------------------------------------
    vmem_physical = _vmem_capacity_bytes()
    vmem_limit = min(int(vmem_physical * 0.75), 112 * 1024 * 1024)
    budget = int(vmem_limit * 0.55)
    # Bytes per (row, class) element: 2 stream buffers in the input dtype plus
    # ~4 full-tile f32 temporaries (f32 cast, weights, products, exp).
    bytes_per_elem = 2 * itemsize + 16

    if num_cores is None:
        num_cores = _num_tensorcores()
    num_cores = max(1, min(int(num_cores), 2))

    # --- class-axis tiling only when full-C rows would get too short ---------
    if tile_c is None:
        min_rows = min(256, ((N + pack - 1) // pack) * pack)
        rows_full_c = budget // (C * bytes_per_elem)
        if rows_full_c >= min_rows or C < 256:
            tile_c = C
        else:
            tile_c = budget // (min_rows * bytes_per_elem)
            tile_c = max(128, _round_down(tile_c, 128))
            tile_c = min(tile_c, _round_down(C, 128))
    assert tile_c == C or (tile_c % 128 == 0 and tile_c < C), "invalid tile_c"
    num_c_blocks = pl.cdiv(C, tile_c)

    # --- batch tiling sized from the byte budget (no artificial row cap) -----
    if tile_n is None:
        rows = budget // (tile_c * bytes_per_elem)
        tile_n = max(pack, _round_down(rows, pack))
    if tile_n >= N:
        tile_n = N                           # full-extent block (handles N < 8 too)
    else:
        tile_n = max(8, _round_down(tile_n, 8))
    num_tiles = pl.cdiv(N, tile_n)
    num_cores = min(num_cores, num_tiles)
    tiles_per_core = pl.cdiv(num_tiles, num_cores)

    mask_rows = num_cores * tiles_per_core * tile_n > N
    mask_cols = num_c_blocks * tile_c > C

    def pred_map(p, j, k):
        # Clamp phantom blocks (odd tile count vs core split) onto a valid block;
        # their rows are fully masked inside the kernel so they contribute zero.
        b = jnp.minimum(p * tiles_per_core + j, num_tiles - 1)
        return (b, k)

    def tgt_map(p, j, k):
        b = jnp.minimum(p * tiles_per_core + j, num_tiles - 1)
        return (b, 0)

    kernel = functools.partial(
        _label_smoothing_kernel,
        confidence=float(confidence),
        smoothing=float(smoothing),
        n_total=N,
        c_total=C,
        mask_rows=bool(mask_rows),
        mask_cols=bool(mask_cols),
    )

    partial_sums = pl.pallas_call(
        kernel,
        out_shape=jax.ShapeDtypeStruct((num_cores, 1), jnp.float32),
        grid=(num_cores, tiles_per_core, num_c_blocks),
        in_specs=[
            pl.BlockSpec((tile_n, tile_c), pred_map),
            pl.BlockSpec((tile_n, 1), tgt_map),
        ],
        out_specs=pl.BlockSpec((1, 1), lambda p, j, k: (p, 0)),
        scratch_shapes=[
            pltpu.VMEM((tile_n, 1), jnp.float32),   # running max
            pltpu.VMEM((tile_n, 1), jnp.float32),   # running exp-sum
            pltpu.VMEM((tile_n, 1), jnp.float32),   # running weighted sum
        ],
        compiler_params=pltpu.CompilerParams(
            dimension_semantics=("parallel", "arbitrary", "arbitrary"),
            vmem_limit_bytes=vmem_limit,
        ),
    )(pred, tgt2d)

    # Combine per-core partial sums and divide by the true batch size.
    return jnp.sum(partial_sums) / jnp.float32(N)


def _reference_loss(pred, target, smoothing=0.1):
    confidence = 1.0 - smoothing
    logp = jax.nn.log_softmax(pred.astype(jnp.float32), axis=-1)
    c = pred.shape[-1]
    true_dist = jax.nn.one_hot(target, c, dtype=jnp.float32) * confidence + smoothing / c
    return jnp.mean(jnp.sum(-true_dist * logp, axis=-1))


if __name__ == "__main__":
    key = jax.random.PRNGKey(0)
    k1, k2, k3, k4 = jax.random.split(key, 4)
    smoothing = 0.1

    # Case 1: small (N, C); auto sizing -> a single full-extent block.
    N, C = 20, 32
    pred = jax.random.normal(k1, (N, C), dtype=jnp.float32)
    target = jax.random.randint(k2, (N,), 0, C, dtype=jnp.int32)
    ref = _reference_loss(pred, target, smoothing)
    loss = label_smoothing_loss(pred, target, smoothing)
    jax.block_until_ready(loss)
    assert jnp.allclose(loss, ref, atol=1e-5, rtol=1e-5), (loss, ref)

    # Case 2: forced tiny row tiles + forced 2-way core split -> exercises the
    # partial last tile, the clamped phantom tile, and cross-tile accumulation.
    loss = label_smoothing_loss(pred, target, smoothing, tile_n=8, num_cores=2)
    jax.block_until_ready(loss)
    assert jnp.allclose(loss, ref, atol=1e-5, rtol=1e-5), (loss, ref)

    # Case 3: class-axis tiling with online-LSE carry (tile_c=128 over C=320),
    # including a partial last class tile (column mask) and partial row tile.
    N2, C2 = 20, 320
    pred2 = jax.random.normal(k3, (N2, C2), dtype=jnp.float32)
    target2 = jax.random.randint(k4, (N2,), 0, C2, dtype=jnp.int32)
    ref2 = _reference_loss(pred2, target2, smoothing)
    loss2 = label_smoothing_loss(pred2, target2, smoothing,
                                 tile_n=8, tile_c=128, num_cores=2)
    jax.block_until_ready(loss2)
    assert jnp.allclose(loss2, ref2, atol=1e-5, rtol=1e-5), (loss2, ref2)

    print("KERNEL_OK")
</pallas_src>

<mosaic_0001>
module attributes {stable_mosaic.version = 11 : i64} {
  func.func @_label_smoothing_kernel(%arg0: i32, %arg1: i32, %arg2: i32, %arg3: memref<20x32xf32, #tpu.memory_space<vmem>>, %arg4: memref<20x1xi32, #tpu.memory_space<vmem>>, %arg5: memref<1x1xf32, #tpu.memory_space<vmem>>, %arg6: memref<20x1xf32, #tpu.memory_space<vmem>>, %arg7: memref<20x1xf32, #tpu.memory_space<vmem>>, %arg8: memref<20x1xf32, #tpu.memory_space<vmem>>) attributes {dimension_semantics = [#tpu.dimension_semantics<parallel>, #tpu.dimension_semantics<arbitrary>, #tpu.dimension_semantics<arbitrary>], iteration_bounds = array<i64: 1, 1, 1>, scalar_prefetch = 0 : i64, scratch_operands = 3 : i64, tpu.core_type = #tpu.core_type<tc>, window_params = [{transform_indices = @transform_0, window_bounds = array<i64: 20, 32>}, {transform_indices = @transform_1, window_bounds = array<i64: 20, 1>}, {transform_indices = @transform_2, window_bounds = array<i64: 1, 1>}]} {
    %c0_i32 = arith.constant 0 : i32
    %0 = arith.cmpi eq, %arg1, %c0_i32 : i32
    %c0_i32_0 = arith.constant 0 : i32
    %1 = arith.cmpi eq, %arg2, %c0_i32_0 : i32
    %2 = arith.andi %0, %1 : i1
    %3 = arith.extui %2 : i1 to i32
    %c0_i32_1 = arith.constant 0 : i32
    %4 = arith.cmpi ne, %3, %c0_i32_1 : i32
    scf.if %4 {
      %cst_25 = arith.constant 0.000000e+00 : f32
      %44 = vector.broadcast %cst_25 : f32 to vector<1x1xf32>
      %c0_26 = arith.constant 0 : index
      %c0_27 = arith.constant 0 : index
      %45 = vector.load %arg5[%c0_26, %c0_27] : memref<1x1xf32, #tpu.memory_space<vmem>>, vector<1x1xf32>
      tpu.vector_store %arg5[%c0_26, %c0_27], %44 {strides = array<i32>} : memref<1x1xf32, #tpu.memory_space<vmem>>, vector<1x1xf32>,
    } else {
    }
    %c0_i32_2 = arith.constant 0 : i32
    %5 = arith.cmpi eq, %arg2, %c0_i32_2 : i32
    %6 = arith.extui %5 : i1 to i32
    %c0_i32_3 = arith.constant 0 : i32
    %7 = arith.cmpi ne, %6, %c0_i32_3 : i32
    scf.if %7 {
      %cst_25 = arith.constant 0xFF800000 : f32
      %44 = vector.broadcast %cst_25 : f32 to vector<20x1xf32>
      %c0_26 = arith.constant 0 : index
      %c0_27 = arith.constant 0 : index
      %45 = vector.load %arg6[%c0_26, %c0_27] : memref<20x1xf32, #tpu.memory_space<vmem>>, vector<20x1xf32>
      tpu.vector_store %arg6[%c0_26, %c0_27], %44 {strides = array<i32>} : memref<20x1xf32, #tpu.memory_space<vmem>>, vector<20x1xf32>,
      %cst_28 = arith.constant 0.000000e+00 : f32
      %46 = vector.broadcast %cst_28 : f32 to vector<20x1xf32>
      %c0_29 = arith.constant 0 : index
      %c0_30 = arith.constant 0 : index
      %47 = vector.load %arg7[%c0_29, %c0_30] : memref<20x1xf32, #tpu.memory_space<vmem>>, vector<20x1xf32>
      tpu.vector_store %arg7[%c0_29, %c0_30], %46 {strides = array<i32>} : memref<20x1xf32, #tpu.memory_space<vmem>>, vector<20x1xf32>,
      %cst_31 = arith.constant 0.000000e+00 : f32
      %48 = vector.broadcast %cst_31 : f32 to vector<20x1xf32>
      %c0_32 = arith.constant 0 : index
      %c0_33 = arith.constant 0 : index
      %49 = vector.load %arg8[%c0_32, %c0_33] : memref<20x1xf32, #tpu.memory_space<vmem>>, vector<20x1xf32>
      tpu.vector_store %arg8[%c0_32, %c0_33], %48 {strides = array<i32>} : memref<20x1xf32, #tpu.memory_space<vmem>>, vector<20x1xf32>,
    } else {
    }
    %c0 = arith.constant 0 : index
    %c0_4 = arith.constant 0 : index
    %8 = vector.load %arg3[%c0, %c0_4] : memref<20x32xf32, #tpu.memory_space<vmem>>, vector<20x32xf32>
    %9 = tpu.iota {dimensions = array<i32: 1>} : vector<20x32xi32>
    %c0_5 = arith.constant 0 : index
    %c0_6 = arith.constant 0 : index
    %10 = vector.load %arg4[%c0_5, %c0_6] : memref<20x1xi32, #tpu.memory_space<vmem>>, vector<20x1xi32>
    %c32_i32 = arith.constant 32 : i32
    %11 = arith.muli %arg2, %c32_i32 : i32
    %12 = vector.broadcast %11 : i32 to vector<20x1xi32>
    %13 = arith.subi %10, %12 : vector<20x1xi32>
    %14 = vector.broadcast %13 : vector<20x1xi32> to vector<20x32xi32>
    %15 = arith.cmpi eq, %9, %14 : vector<20x32xi32>
    %cst = arith.constant 0.903124988 : f32
    %cst_7 = arith.constant 3.125000e-03 : f32
    %16 = vector.broadcast %cst : f32 to vector<20x32xf32>
    %17 = vector.broadcast %cst_7 : f32 to vector<20x32xf32>
    %18 = arith.select %15, %16, %17 : vector<20x32xi1>, vector<20x32xf32>
    %19 = arith.mulf %18, %8 : vector<20x32xf32>
    %cst_8 = arith.constant dense<0xFF800000> : vector<20xf32>
    %20 = vector.multi_reduction <maximumf>, %8, %cst_8 [1] : vector<20x32xf32> to vector<20xf32>
    %21 = vector.shape_cast %20 : vector<20xf32> to vector<20x1xf32>
    %cst_9 = arith.constant dense<0.000000e+00> : vector<20xf32>
    %22 = vector.multi_reduction <add>, %19, %cst_9 [1] : vector<20x32xf32> to vector<20xf32>
    %23 = vector.shape_cast %22 : vector<20xf32> to vector<20x1xf32>
    %c0_10 = arith.constant 0 : index
    %c0_11 = arith.constant 0 : index
    %24 = vector.load %arg6[%c0_10, %c0_11] : memref<20x1xf32, #tpu.memory_space<vmem>>, vector<20x1xf32>
    %25 = arith.maximumf %24, %21 : vector<20x1xf32>
    %26 = vector.broadcast %25 : vector<20x1xf32> to vector<20x32xf32>
    %27 = arith.subf %8, %26 : vector<20x32xf32>
    %28 = math.exp %27 : vector<20x32xf32>
    %cst_12 = arith.constant dense<0.000000e+00> : vector<20xf32>
    %29 = vector.multi_reduction <add>, %28, %cst_12 [1] : vector<20x32xf32> to vector<20xf32>
    %30 = vector.shape_cast %29 : vector<20xf32> to vector<20x1xf32>
    %c0_13 = arith.constant 0 : index
    %c0_14 = arith.constant 0 : index
    %31 = vector.load %arg7[%c0_13, %c0_14] : memref<20x1xf32, #tpu.memory_space<vmem>>, vector<20x1xf32>
    %32 = arith.subf %24, %25 : vector<20x1xf32>
    %33 = math.exp %32 : vector<20x1xf32>
    %34 = arith.mulf %31, %33 : vector<20x1xf32>
    %35 = arith.addf %34, %30 : vector<20x1xf32>
    %c0_15 = arith.constant 0 : index
    %c0_16 = arith.constant 0 : index
    %36 = vector.load %arg7[%c0_15, %c0_16] : memref<20x1xf32, #tpu.memory_space<vmem>>, vector<20x1xf32>
    tpu.vector_store %arg7[%c0_15, %c0_16], %35 {strides = array<i32>} : memref<20x1xf32, #tpu.memory_space<vmem>>, vector<20x1xf32>,
    %c0_17 = arith.constant 0 : index
    %c0_18 = arith.constant 0 : index
    %37 = vector.load %arg8[%c0_17, %c0_18] : memref<20x1xf32, #tpu.memory_space<vmem>>, vector<20x1xf32>
    %38 = arith.addf %37, %23 : vector<20x1xf32>
    %c0_19 = arith.constant 0 : index
    %c0_20 = arith.constant 0 : index
    %39 = vector.load %arg8[%c0_19, %c0_20] : memref<20x1xf32, #tpu.memory_space<vmem>>, vector<20x1xf32>
    tpu.vector_store %arg8[%c0_19, %c0_20], %38 {strides = array<i32>} : memref<20x1xf32, #tpu.memory_space<vmem>>, vector<20x1xf32>,
    %c0_21 = arith.constant 0 : index
    %c0_22 = arith.constant 0 : index
    %40 = vector.load %arg6[%c0_21, %c0_22] : memref<20x1xf32, #tpu.memory_space<vmem>>, vector<20x1xf32>
    tpu.vector_store %arg6[%c0_21, %c0_22], %25 {strides = array<i32>} : memref<20x1xf32, #tpu.memory_space<vmem>>, vector<20x1xf32>,
    %c0_i32_23 = arith.constant 0 : i32
    %41 = arith.cmpi eq, %arg2, %c0_i32_23 : i32
    %42 = arith.extui %41 : i1 to i32
    %c0_i32_24 = arith.constant 0 : i32
    %43 = arith.cmpi ne, %42, %c0_i32_24 : i32
    scf.if %43 {
      %c0_25 = arith.constant 0 : index
      %c0_26 = arith.constant 0 : index
      %44 = vector.load %arg6[%c0_25, %c0_26] : memref<20x1xf32, #tpu.memory_space<vmem>>, vector<20x1xf32>
      %c0_27 = arith.constant 0 : index
      %c0_28 = arith.constant 0 : index
      %45 = vector.load %arg7[%c0_27, %c0_28] : memref<20x1xf32, #tpu.memory_space<vmem>>, vector<20x1xf32>
      %46 = math.log %45 : vector<20x1xf32>
      %47 = arith.addf %44, %46 : vector<20x1xf32>
      %c0_29 = arith.constant 0 : index
      %c0_30 = arith.constant 0 : index
      %48 = vector.load %arg8[%c0_29, %c0_30] : memref<20x1xf32, #tpu.memory_space<vmem>>, vector<20x1xf32>
      %49 = arith.subf %47, %48 : vector<20x1xf32>
      %c0_31 = arith.constant 0 : index
      %c0_32 = arith.constant 0 : index
      %50 = vector.load %arg5[%c0_31, %c0_32] : memref<1x1xf32, #tpu.memory_space<vmem>>, vector<1x1xf32>
      %cst_33 = arith.constant dense<0.000000e+00> : vector<1xf32>
      %51 = vector.multi_reduction <add>, %49, %cst_33 [0] : vector<20x1xf32> to vector<1xf32>
      %52 = vector.shape_cast %51 : vector<1xf32> to vector<1x1xf32>
      %53 = arith.addf %50, %52 : vector<1x1xf32>
      %c0_34 = arith.constant 0 : index
      %c0_35 = arith.constant 0 : index
      %54 = vector.load %arg5[%c0_34, %c0_35] : memref<1x1xf32, #tpu.memory_space<vmem>>, vector<1x1xf32>
      tpu.vector_store %arg5[%c0_34, %c0_35], %53 {strides = array<i32>} : memref<1x1xf32, #tpu.memory_space<vmem>>, vector<1x1xf32>,
    } else {
    }
    return
  }
  func.func @transform_0(%arg0: i32, %arg1: i32, %arg2: i32) -> (i32, i32) {
    %c1_i32 = arith.constant 1 : i32
    %0 = arith.muli %arg0, %c1_i32 : i32
    %1 = arith.addi %0, %arg1 : i32
    %c0_i32 = arith.constant 0 : i32
    %2 = arith.minsi %1, %c0_i32 : i32
    %c0_i32_0 = arith.constant 0 : i32
    return %2, %arg2 : i32, i32
  }
  func.func @transform_1(%arg0: i32, %arg1: i32, %arg2: i32) -> (i32, i32) {
    %c1_i32 = arith.constant 1 : i32
    %0 = arith.muli %arg0, %c1_i32 : i32
    %1 = arith.addi %0, %arg1 : i32
    %c0_i32 = arith.constant 0 : i32
    %2 = arith.minsi %1, %c0_i32 : i32
    %c0_i32_0 = arith.constant 0 : i32
    %c0_i32_1 = arith.constant 0 : i32
    return %2, %c0_i32_0 : i32, i32
  }
  func.func @transform_2(%arg0: i32, %arg1: i32, %arg2: i32) -> (i32, i32) {
    %c0_i32 = arith.constant 0 : i32
    %c0_i32_0 = arith.constant 0 : i32
    return %arg0, %c0_i32 : i32, i32
  }
}

</mosaic_0001>

<bundles_post_ra>
// kernel: tpu_custom_call.1
= control target key start
LH: loop header
LB: loop body
LE: loop exit
PB: predicated region body
PF: predicated region fallthrough
CT: control target
= control target key end

     0   :  { %vm129_vm0 = vcmask 261120   ;;  %vm136_vm1 = vcmask 257024   ;;  %s463_s0 = inlined_call_operand.vmem [shape: f32[20,32], index: 0, kind: input, shape index: {}]   ;;  %s464_s1 = inlined_call_operand.vmem [shape: s32[20,1], index: 1, kind: input, shape index: {}]   ;;  %s465_s2 = inlined_call_operand.hbm [shape: f32[1,1], index: 2, kind: output, shape index: {}]  }
   0x1   :  { %v360_v0 = vld [vmem:[%s463_s0] sm:$0xff]  ;;  %v365_v1 = vld [vmem:[%s463_s0 + $0x10] sm:$0xf]  ;;  %v370_v2 = vld [vmem:[%s463_s0 + $0x8] sm:$0xff] }
   0x2   :  { %v130_v3 = vsel %vm129_vm0, %v360_v0, -inf  ;;  %v137_v4 = vsel %vm136_vm1, %v365_v1, -inf }
   0x3   :  { %7 = vsyncpa [#allocation6], 0  ;;  %131 = vmax.xlane.f32.xlu0 %v130_v3  ;;  %138 = vmax.xlane.f32.xlu1 %v137_v4  ;;  %v133_v5 = vsel %vm129_vm0, %v370_v2, -inf  ;;  %vm87_vm2 = vcmask 7168   ;;  %v337_v6 = vmov -inf   ;;  %vm90_vm3 = vcmask 3072  }
   0x4   :  { %88 = vst.msk [vmem:[#allocation2] sm:$0xff] %vm87_vm2, %v337_v6  ;;  %89 = vst.msk [vmem:[#allocation2 + $0x8] sm:$0xff] %vm87_vm2, %v337_v6  ;;  %v338_v7 = vmov 0   ;;  %v339_v8 = vmov 0.0   ;;  %v103_v21 = vld [vmem:[%s464_s1] sm:$0xff]  ;;  %v104_v22 = vld [vmem:[%s464_s1 + $0x8] sm:$0xff]  ;;  %v101_v33 = vlaneseq }
   0x5   :  { %91 = vst.msk [vmem:[#allocation2 + $0x10] sm:$0xf] %vm90_vm3, %v337_v6  ;;  %293 = vset.pattern.permute.xlu1 %v338_v7  ;;  %294 = vset.pattern.permute.xlu0 %v338_v7  ;;  %94 = vst.msk [vmem:[#allocation3 + $0x10] sm:$0xf] %vm90_vm3, %v339_v8  ;;  %v105_v23 = vld [vmem:[%s464_s1 + $0x10] sm:$0xf] }
   0x6   :  { %92 = vst.msk [vmem:[#allocation3] sm:$0xff] %vm87_vm2, %v339_v8  ;;  %93 = vst.msk [vmem:[#allocation3 + $0x8] sm:$0xff] %vm87_vm2, %v339_v8  ;;  %v102_v35 = vand.u32 127, %v101_v33  ;;  %v340_v40 = vmov 0.003125   ;;  %vm82_vm7 = vcmask 0  }
   0x7   :  { %134 = vmax.xlane.f32.xlu0 %v133_v5  ;;  %95 = vst.msk [vmem:[#allocation4] sm:$0xff] %vm87_vm2, %v339_v8  ;;  %96 = vst.msk [vmem:[#allocation4 + $0x8] sm:$0xff] %vm87_vm2, %v339_v8  ;;  %s341_s1 = smov [#allocation5]  }
   0x8   :  { %97 = vst.msk [vmem:[#allocation4 + $0x10] sm:$0xf] %vm90_vm3, %v339_v8  ;;  %s268_s20 = sshll.u32 %s341_s1, 4  ;;  %s269_s20 = int_to_ptr.vmem [resolvable:$true] %s268_s20 }
   0x9   :  { %83 = vst.msk [vmem:[#allocation5] sm:$0x1] %vm82_vm7, %v339_v8  ;;  %s313_s21 = scalar_lea.vmem %s269_s20, 16  ;;  %s317_s22 = scalar_lea.vmem %s269_s20, 32 }
   0xa   :  { %p314_p0 = scmp.ne.s32.totalorder %s269_s20, %s313_s21  ;;  %p318_p1 = scmp.lt.s32.totalorder %s269_s20, %s269_s20 }
   0xb   :  { %v393_v9 = vld [vmem:[#allocation2] sm:$0xff]  ;;  %v403_v15 = vld [vmem:[#allocation2 + $0x8] sm:$0xff]  ;;  %p319_p2 = scmp.lt.s32.totalorder %s317_s22, %s313_s21 }
   0xc   :  { %v395_v10 = vld [vmem:[#allocation2 + $0x10] sm:$0xf] }
   0xd   :  { %v188_v58 = vld [vmem:[#allocation3] sm:$0xff]  ;;  %v189_v62 = vld [vmem:[#allocation3 + $0x8] sm:$0xff]  ;;  %p320_p3 = por %p319_p2, %p318_p1 }
   0xf   :  { %v213_v8 = vld [vmem:[#allocation4 + $0x10] sm:$0xf]  ;;  %p321_p4 = pnand %p320_p3, %p314_p0 }
  0x90   :  { %v132_v11 = vpop.xlane.xlu0 %131  ;;  %v139_v12 = vpop.xlane.xlu1 %138 }
  0x91   :  { %v398_v13 = vmax.f32 %v393_v9, %v132_v11  ;;  %v401_v14 = vmax.f32 %v395_v10, %v139_v12 }
  0x93   :  { %v191_v16 = vsub.f32 %v393_v9, %v398_v13  ;;  %220 = vst.msk [vmem:[#allocation2] sm:$0xff] %vm87_vm2, %v398_v13  ;;  %157 = vperm.xlu1 %293, %v398_v13   ;;  %v193_v17 = vsub.f32 %v395_v10, %v401_v14  ;;  %v211_v9 = vld [vmem:[#allocation4] sm:$0xff] }
  0x94   :  { %222 = vst.msk [vmem:[#allocation2 + $0x10] sm:$0xf] %vm90_vm3, %v401_v14  ;;  %v135_v18 = vpop.xlane.xlu0 %134 }
  0x95   :  { %v153_v19 = vmax.f32 %v403_v15, %v135_v18  ;;  %v194_v54 = vmul.f32 1.442695, %v191_v16  ;;  %v198_v56 = vmul.f32 1.442695, %v193_v17 }
  0x97   :  { %v192_v20 = vsub.f32 %v403_v15, %v153_v19  ;;  %221 = vst.msk [vmem:[#allocation2 + $0x8] sm:$0xff] %vm87_vm2, %v153_v19  ;;  %162 = vperm.xlu0 %294, %v153_v19   ;;  %167 = vperm.xlu1 %293, %v401_v14   ;;  %v212_v15 = vld [vmem:[#allocation4 + $0x8] sm:$0xff] }
  0x99   :  { %v196_v55 = vmul.f32 1.442695, %v192_v20 }
  0x9b   :  { %112 = vperm.xlu1 %293, %v103_v21  }
  0x9f   :  { %115 = vperm.xlu1 %293, %v104_v22   ;;  %v226_v22 = vld [vmem:[#allocation2] sm:$0xff] }
  0xa3   :  { %118 = vperm.xlu1 %293, %v105_v23  }
 0x112   :  { %v158_v24 = vpop.permute.xlu1 %157 }
 0x113   :  { %v170_v25 = vsub.f32 %v360_v0, %v158_v24 }
 0x115   :  { %v173_v26 = vmul.f32 1.442695, %v170_v25 }
 0x116   :  { %v163_v27 = vpop.permute.xlu0 %162  ;;  %v168_v28 = vpop.permute.xlu1 %167 }
 0x117   :  { %295 = vpow2.f32 %v173_v26  ;;  %v171_v29 = vsub.f32 %v370_v2, %v163_v27  ;;  %v172_v30 = vsub.f32 %v365_v1, %v168_v28  ;;  %v227_v27 = vld [vmem:[#allocation2 + $0x8] sm:$0xff] }
 0x119   :  { %v175_v31 = vmul.f32 1.442695, %v171_v29  ;;  %v177_v32 = vmul.f32 1.442695, %v172_v30  ;;  %v228_v30 = vld [vmem:[#allocation2 + $0x10] sm:$0xf] }
 0x11a   :  { %v113_v34 = vpop.permute.xlu1 %112 }
 0x11b   :  { %297 = vpow2.f32 %v175_v31  ;;  %vm120_vm4 = vcmp.eq.s32.totalorder %v102_v35, %v113_v34 }
 0x11c   :  { %299 = vpow2.f32 %v177_v32  ;;  %v123_v41 = vsel %vm120_vm4, 0.903125, %v340_v40 }
 0x11d   :  { %v126_v48 = vmul.f32 %v123_v41, %v360_v0  ;;  %301 = vpow2.f32 %v194_v54 }
 0x11e   :  { %v116_v36 = vpop.permute.xlu1 %115  ;;  %303 = vpow2.f32 %v196_v55 }
 0x11f   :  { %vm121_vm6 = vcmp.eq.s32.totalorder %v102_v35, %v116_v36  ;;  %v140_v51 = vsel %vm129_vm0, %v126_v48, 0.0  ;;  %305 = vpow2.f32 %v198_v56  ;;  %v247_v48 = vld [vmem:[#allocation5] sm:$0x1] }
 0x120   :  { %v124_v49 = vsel %vm121_vm6, 0.903125, %v340_v40 }
 0x121   :  { %v296_v37 = vpop.eup %295  ;;  %v127_v52 = vmul.f32 %v124_v49, %v370_v2 }
 0x122   :  { %v119_v38 = vpop.permute.xlu1 %118  ;;  %v179_v39 = vsel %vm129_vm0, %v296_v37, 0.0 }
 0x123   :  { %vm122_vm5 = vcmp.eq.s32.totalorder %v102_v35, %v119_v38  ;;  %180 = vadd.xlane.f32.xlu1 %v179_v39  ;;  %v143_v53 = vsel %vm129_vm0, %v127_v52, 0.0 }
 0x124   :  { %v125_v42 = vsel %vm122_vm5, 0.903125, %v340_v40 }
 0x125   :  { %v298_v43 = vpop.eup %297  ;;  %v128_v46 = vmul.f32 %v125_v42, %v365_v1  ;;  %v190_v1 = vld [vmem:[#allocation3 + $0x10] sm:$0xf] }
 0x126   :  { %v300_v44 = vpop.eup %299  ;;  %v182_v45 = vsel %vm129_vm0, %v298_v43, 0.0 }
 0x127   :  { %183 = vadd.xlane.f32.xlu0 %v182_v45  ;;  %v185_v47 = vsel %vm136_vm1, %v300_v44, 0.0  ;;  %v146_v50 = vsel %vm136_vm1, %v128_v46, 0.0  ;;  %v302_v57 = vpop.eup %301 }
 0x128   :  { %186 = vadd.xlane.f32.xlu1 %v185_v47  ;;  %v200_v59 = vmul.f32 %v302_v57, %v188_v58  ;;  %v304_v60 = vpop.eup %303 }
 0x129   :  { %v306_v63 = vpop.eup %305  ;;  %v201_v2 = vmul.f32 %v304_v60, %v189_v62 }
 0x12a   :  { %v202_v4 = vmul.f32 %v306_v63, %v190_v1 }
 0x12b   :  { %147 = vadd.xlane.f32.xlu0 %v146_v50 }
 0x12c   :  { %141 = vadd.xlane.f32.xlu1 %v140_v51 }
 0x130   :  { %144 = vadd.xlane.f32.xlu1 %v143_v53 }
 0x1b0   :  { %v181_v61 = vpop.xlane.xlu1 %180 }
 0x1b1   :  { %v203_v0 = vadd.f32 %v200_v59, %v181_v61 }
 0x1b3   :  { %207 = vst.msk [vmem:[#allocation3] sm:$0xff] %vm87_vm2, %v203_v0 }
 0x1b4   :  { %v184_v3 = vpop.xlane.xlu0 %183 }
 0x1b5   :  { %v204_v5 = vadd.f32 %v201_v2, %v184_v3  ;;  %v187_v6 = vpop.xlane.xlu1 %186 }
 0x1b6   :  { %v205_v7 = vadd.f32 %v202_v4, %v187_v6 }
 0x1b7   :  { %208 = vst.msk [vmem:[#allocation3 + $0x8] sm:$0xff] %vm87_vm2, %v204_v5 }
 0x1b8   :  { %210 = vst.msk [vmem:[#allocation3 + $0x10] sm:$0xf] %vm90_vm3, %v205_v7  ;;  %v148_v10 = vpop.xlane.xlu0 %147 }
 0x1b9   :  { %v216_v11 = vadd.f32 %v213_v8, %v148_v10  ;;  %v142_v12 = vpop.xlane.xlu1 %141 }
 0x1ba   :  { %v214_v13 = vadd.f32 %v211_v9, %v142_v12  ;;  %v229_v14 = vld [vmem:[#allocation3] sm:$0xff] }
 0x1bb   :  { %219 = vst.msk [vmem:[#allocation4 + $0x10] sm:$0xf] %vm90_vm3, %v216_v11  ;;  %307 = vlog2.f32 %v229_v14 }
 0x1bc   :  { %217 = vst.msk [vmem:[#allocation4] sm:$0xff] %vm87_vm2, %v214_v13 }
 0x1bd   :  { %v145_v16 = vpop.xlane.xlu1 %144 }
 0x1be   :  { %v215_v17 = vadd.f32 %v212_v15, %v145_v16  ;;  %v230_v18 = vld [vmem:[#allocation3 + $0x8] sm:$0xff] }
 0x1bf   :  { %v231_v19 = vld [vmem:[#allocation3 + $0x10] sm:$0xf]  ;;  %309 = vlog2.f32 %v230_v18 }
 0x1c0   :  { %218 = vst.msk [vmem:[#allocation4 + $0x8] sm:$0xff] %vm87_vm2, %v215_v17  ;;  %311 = vlog2.f32 %v231_v19 }
 0x1c2   :  { %v243_v35 = vld [vmem:[#allocation4 + $0x10] sm:$0xf] }
 0x1c3   :  { %v241_v29 = vld [vmem:[#allocation4] sm:$0xff] }
 0x1c5   :  { %v308_v20 = vpop.eup %307 }
 0x1c6   :  { %v233_v21 = vmul.f32 0.6931472, %v308_v20 }
 0x1c7   :  { %v242_v34 = vld [vmem:[#allocation4 + $0x8] sm:$0xff] }
 0x1c8   :  { %v238_v23 = vadd.f32 %v233_v21, %v226_v22 }
 0x1c9   :  { %v310_v24 = vpop.eup %309 }
 0x1ca   :  { %v312_v25 = vpop.eup %311  ;;  %v235_v26 = vmul.f32 0.6931472, %v310_v24  ;;  %v244_v32 = vsub.f32 %v238_v23, %v241_v29 }
 0x1cb   :  { %v237_v28 = vmul.f32 0.6931472, %v312_v25 }
 0x1cc   :  { %v239_v31 = vadd.f32 %v235_v26, %v227_v27  ;;  %v248_v38 = vsel %vm87_vm2, %v244_v32, 0.0 }
 0x1cd   :  { %v240_v33 = vadd.f32 %v237_v28, %v228_v30 }
 0x1ce   :  { %v245_v36 = vsub.f32 %v239_v31, %v242_v34 }
 0x1cf   :  { %v246_v37 = vsub.f32 %v240_v33, %v243_v35 }
 0x1d0   :  { %v249_v39 = vsel %vm87_vm2, %v245_v36, 0.0 }
 0x1d1   :  { %v250_v40 = vadd.f32 %v249_v39, %v248_v38  ;;  %v251_v41 = vsel %vm90_vm3, %v246_v37, 0.0 }
 0x1d3   :  { %v252_v42 = vadd.f32 %v251_v41, %v250_v40 }
 0x1d5   :  { %v253_v43 = vrot.slane %v252_v42, 4 }
 0x1d7   :  { %v254_v44 = vadd.f32 %v253_v43, %v252_v42 }
 0x1d9   :  { %v255_v45 = vrot.slane %v254_v44, 2 }
 0x1db   :  { %v256_v46 = vadd.f32 %v255_v45, %v254_v44 }
 0x1dd   :  { %v257_v47 = vrot.slane %v256_v46, 1 }
 0x1df   :  { %v258_v49 = vadd.f32 %v257_v47, %v256_v46 }
 0x1e1   :  { %v259_v50 = vadd.f32 %v258_v49, %v247_v48 }
 0x1e3   :  { %261 = vst.msk [vmem:[#allocation5] sm:$0x1] %vm82_vm7, %v259_v50 }
 0x1e4   :  { %324 = shalt.err (!%p321_p4)
}
 0x1e5   :  { %s325_s25 = scalar_lea.hbm %s465_s2, 16 }
 0x1e6   :  { %p326_p5 = scmp.ne.s32.totalorder %s465_s2, %s325_s25  ;;  %p329_p6 = scmp.lt.u32.totalorder %s325_s25, %s465_s2 }
 0x1e8   :  { %p331_p7 = pnand %p329_p6, %p326_p5 }
 0x1ea   :  { %334 = shalt.err (!%p331_p7)
}
 0x1eb   :  { %271 = dma.vmem_to_hbm [thread:$0]  %s269_s20, 16, %s465_s2, [#allocation6]  }
 0x1ec   :  { %335 = dma.done.wait [#allocation6], 16  }
 0x1ed   :  { %336 = vsyncadd [#allocation6], 4294967280 }
 0x1ee   :  { %275 = vsyncpa [#allocation6], 1 }

</bundles_post_ra>
